<compile_context>
chip_gen: v7x
topology: tpu7x:2x2x1
jax: 0.10.0
libtpu: 0.0.40
codegen_flags: <defaults>
</compile_context>

<pallas_src>
import functools

import jax
import jax.numpy as jnp
import numpy as np
from jax import lax
from jax.experimental import pallas as pl
from jax.experimental.pallas import tpu as pltpu


def _sinkhorn_kernel(mu_ref, nu_ref, c_ref, out_ref, *, eps, max_iter, thresh):
    mu = mu_ref[...]                              # (S, B)
    nu = nu_ref[...]                              # (S, N)
    s_rows = mu.shape[0]
    inv_eps = 1.0 / eps

    # Loop-invariant pieces, hoisted above the while loop.
    neg_c_s = c_ref[...] * (-inv_eps)             # (B, N) == -C/eps
    k_mat = jnp.exp(neg_c_s)                      # (B, N), in (0, 1] for C >= 0
    log_mu = jnp.log(mu + 1e-8)                   # (S, B)
    log_nu = jnp.log(nu + 1e-8)                   # (S, N)

    # Contract last dims: (S,N) x (B,N) -> (S,B)   (i.e. p_v @ K^T, no explicit
    # transpose materialized).
    dn_nt = (((1,), (1,)), ((), ()))

    def cond(carry):
        i, _, _, err = carry
        return jnp.logical_and(i < max_iter, err >= thresh)

    def body(carry):
        i, u_s, v_s, _ = carry                    # u_s = u/eps, v_s = v/eps

        # u_new/eps = log_mu - LSE_n((v - C)/eps)   (u/eps term cancels)
        m_v = jnp.max(v_s, axis=-1, keepdims=True)                  # (S, 1)
        p_v = jnp.exp(v_s - m_v)                                    # (S, N) <= 1
        s_n = lax.dot_general(p_v, k_mat, dn_nt,
                              preferred_element_type=jnp.float32)   # (S, B) MXU
        u_s_new = log_mu - (m_v + jnp.log(s_n))                     # (S, B)

        # v_new/eps = log_nu - LSE_b((u_new - C)/eps)   (v/eps term cancels)
        m_u = jnp.max(u_s_new, axis=-1, keepdims=True)              # (S, 1)
        p_u = jnp.exp(u_s_new - m_u)                                # (S, B) <= 1
        s_b = jnp.dot(p_u, k_mat,
                      preferred_element_type=jnp.float32)           # (S, N) MXU
        v_s_new = log_nu - (m_u + jnp.log(s_b))                     # (S, N)

        # PyTorch: err = (u - u1).abs().sum(-1).mean() == (eps/S) * sum|du/eps|
        err = (eps / s_rows) * jnp.sum(jnp.abs(u_s_new - u_s))
        return i + 1, u_s_new, v_s_new, err

    carry0 = (jnp.int32(0), jnp.zeros_like(mu), jnp.zeros_like(nu),
              jnp.float32(jnp.inf))
    _, u_s, v_s, _ = lax.while_loop(cond, body, carry0)

    # Epilogue: res[s,n] = sum_b exp((u + v - C)/eps) * mu[s,b]
    #                    = exp( log((mu * exp(u/eps - m)) @ K) + v/eps + m )
    # Computing through log keeps the final exponent bounded by log(result).
    m_u = jnp.max(u_s, axis=-1, keepdims=True)                      # (S, 1)
    a = mu * jnp.exp(u_s - m_u)                                     # (S, B) in [0, mu]
    inner = jnp.dot(a, k_mat, preferred_element_type=jnp.float32)   # (S, N) MXU
    out_ref[...] = jnp.exp(jnp.log(inner) + v_s + m_u).astype(out_ref.dtype)


def optimal_transport_pallas(mu, nu, C, *, eps=0.01, max_iter=1000, thresh=0.1):
    S, B = mu.shape
    S2, N = nu.shape
    assert S == S2 and C.shape == (B, N)

    kernel = functools.partial(_sinkhorn_kernel, eps=float(eps),
                               max_iter=int(max_iter), thresh=float(thresh))

    return pl.pallas_call(
        kernel,
        out_shape=jax.ShapeDtypeStruct((S, N), jnp.float32),
        grid=(1,),
        in_specs=[pl.BlockSpec((S, B), lambda i: (0, 0)),
                  pl.BlockSpec((S, N), lambda i: (0, 0)),
                  pl.BlockSpec((B, N), lambda i: (0, 0))],
        out_specs=pl.BlockSpec((S, N), lambda i: (0, 0)),
        compiler_params=pltpu.CompilerParams(
            dimension_semantics=("arbitrary",),
            vmem_limit_bytes=32 * 1024 * 1024),
    )(mu.astype(jnp.float32), nu.astype(jnp.float32), C.astype(jnp.float32))


def optimal_transport_reference(mu, nu, C, *, eps=0.01, max_iter=1000, thresh=0.1):
    """Pure-JAX reference mirroring the PyTorch forward (same masked break)."""
    def M(u, v):
        return (-C[None, :, :] + u[:, :, None] + v[:, None, :]) / eps

    log_mu = jnp.log(mu + 1e-8)
    log_nu = jnp.log(nu + 1e-8)

    def body(i, carry):
        u, v, done = carry
        lse_n = jax.scipy.special.logsumexp(M(u, v), axis=-1)
        u_new = eps * (log_mu - lse_n) + u
        lse_b = jax.scipy.special.logsumexp(M(u_new, v), axis=1)
        v_new = eps * (log_nu - lse_b) + v
        err = jnp.mean(jnp.sum(jnp.abs(u_new - u), axis=-1))
        u2 = jnp.where(done, u, u_new)
        v2 = jnp.where(done, v, v_new)
        return u2, v2, jnp.logical_or(done, err < thresh)

    u0 = jnp.zeros_like(mu)
    v0 = jnp.zeros_like(nu)
    u, v, _ = lax.fori_loop(0, max_iter, body, (u0, v0, jnp.array(False)))
    pi = jnp.exp(M(u, v))
    return jnp.einsum('sbn,sb->sn', pi, mu)


if __name__ == "__main__":
    # Small, deterministic example shapes.
    S = 8              # batch of measures
    num_bclass = 8     # B
    num_nclass = 16    # N
    eps = 0.01
    max_iter = 200
    thresh = 0.1

    key = jax.random.PRNGKey(0)
    k1, k2 = jax.random.split(key)

    mu = jax.random.uniform(k1, (S, num_bclass), dtype=jnp.float32) + 0.1
    mu = mu / jnp.sum(mu, axis=-1, keepdims=True)
    nu = jax.random.uniform(k2, (S, num_nclass), dtype=jnp.float32) + 0.1
    nu = nu / jnp.sum(nu, axis=-1, keepdims=True)

    # Deterministic parameter init, matching nn.Parameter(torch.ones(B, N) / 2).
    C = jnp.full((num_bclass, num_nclass), 0.5, dtype=jnp.float32)

    out = optimal_transport_pallas(mu, nu, C, eps=eps, max_iter=max_iter,
                                   thresh=thresh)
    out = jax.block_until_ready(out)

    ref = jax.block_until_ready(
        optimal_transport_reference(mu, nu, C, eps=eps, max_iter=max_iter,
                                    thresh=thresh))

    np.testing.assert_allclose(np.asarray(out), np.asarray(ref),
                               rtol=2e-2, atol=1e-3)
    print("KERNEL_OK")
</pallas_src>

<mosaic_0001>
module attributes {stable_mosaic.version = 11 : i64} {
  func.func @_sinkhorn_kernel(%arg0: i32, %arg1: memref<8x8xf32, #tpu.memory_space<vmem>>, %arg2: memref<8x16xf32, #tpu.memory_space<vmem>>, %arg3: memref<8x16xf32, #tpu.memory_space<vmem>>, %arg4: memref<8x16xf32, #tpu.memory_space<vmem>>) attributes {dimension_semantics = [#tpu.dimension_semantics<arbitrary>], iteration_bounds = array<i64: 1>, scalar_prefetch = 0 : i64, scratch_operands = 0 : i64, tpu.core_type = #tpu.core_type<tc>, window_params = [{pipeline_mode = #tpu.pipeline_mode<synchronous>, transform_indices = @transform_0, window_bounds = array<i64: 8, 8>}, {pipeline_mode = #tpu.pipeline_mode<synchronous>, transform_indices = @transform_1, window_bounds = array<i64: 8, 16>}, {pipeline_mode = #tpu.pipeline_mode<synchronous>, transform_indices = @transform_2, window_bounds = array<i64: 8, 16>}, {pipeline_mode = #tpu.pipeline_mode<synchronous>, transform_indices = @transform_3, window_bounds = array<i64: 8, 16>}]} {
    %c0 = arith.constant 0 : index
    %c0_0 = arith.constant 0 : index
    %0 = vector.load %arg1[%c0, %c0_0] : memref<8x8xf32, #tpu.memory_space<vmem>>, vector<8x8xf32>
    %c0_1 = arith.constant 0 : index
    %c0_2 = arith.constant 0 : index
    %1 = vector.load %arg2[%c0_1, %c0_2] : memref<8x16xf32, #tpu.memory_space<vmem>>, vector<8x16xf32>
    %c0_3 = arith.constant 0 : index
    %c0_4 = arith.constant 0 : index
    %2 = vector.load %arg3[%c0_3, %c0_4] : memref<8x16xf32, #tpu.memory_space<vmem>>, vector<8x16xf32>
    %cst = arith.constant -1.000000e+02 : f32
    %3 = vector.broadcast %cst : f32 to vector<8x16xf32>
    %4 = arith.mulf %2, %3 : vector<8x16xf32>
    %5 = math.exp %4 : vector<8x16xf32>
    %cst_5 = arith.constant 9.99999993E-9 : f32
    %6 = vector.broadcast %cst_5 : f32 to vector<8x8xf32>
    %7 = arith.addf %0, %6 : vector<8x8xf32>
    %8 = math.log %7 : vector<8x8xf32>
    %cst_6 = arith.constant 9.99999993E-9 : f32
    %9 = vector.broadcast %cst_6 : f32 to vector<8x16xf32>
    %10 = arith.addf %1, %9 : vector<8x16xf32>
    %11 = math.log %10 : vector<8x16xf32>
    %cst_7 = arith.constant 0.000000e+00 : f32
    %12 = vector.broadcast %cst_7 : f32 to vector<8x8xf32>
    %cst_8 = arith.constant 0.000000e+00 : f32
    %13 = vector.broadcast %cst_8 : f32 to vector<8x16xf32>
    %c0_i32 = arith.constant 0 : i32
    %cst_9 = arith.constant 0x7F800000 : f32
    %14:4 = scf.while (%arg5 = %c0_i32, %arg6 = %12, %arg7 = %13, %arg8 = %cst_9) : (i32, vector<8x8xf32>, vector<8x16xf32>, f32) -> (i32, vector<8x8xf32>, vector<8x16xf32>, f32) {
      %c200_i32 = arith.constant 200 : i32
      %28 = arith.cmpi slt, %arg5, %c200_i32 : i32
      %cst_14 = arith.constant 1.000000e-01 : f32
      %29 = arith.cmpf oge, %arg8, %cst_14 : f32
      %30 = arith.andi %28, %29 : i1
      scf.condition(%30) %arg5, %arg6, %arg7, %arg8 : i32, vector<8x8xf32>, vector<8x16xf32>, f32
    } do {
    ^bb0(%arg5: i32, %arg6: vector<8x8xf32>, %arg7: vector<8x16xf32>, %arg8: f32):
      %cst_14 = arith.constant dense<0xFF800000> : vector<8xf32>
      %28 = vector.multi_reduction <maximumf>, %arg7, %cst_14 [1] : vector<8x16xf32> to vector<8xf32>
      %29 = vector.shape_cast %28 : vector<8xf32> to vector<8x1xf32>
      %30 = vector.broadcast %29 : vector<8x1xf32> to vector<8x16xf32>
      %31 = arith.subf %arg7, %30 : vector<8x16xf32>
      %32 = math.exp %31 : vector<8x16xf32>
      %cst_15 = arith.constant dense<0.000000e+00> : vector<8x8xf32>
      %33 = tpu.matmul %32, %5, %cst_15 {dimension_numbers = #tpu.dot_dimension_numbers<[1], [1], [0], [0], [0, 0, 1, 0], [], []>} : vector<8x16xf32>, vector<8x16xf32>, vector<8x8xf32> -> vector<8x8xf32>
      %34 = math.log %33 : vector<8x8xf32>
      %35 = vector.broadcast %29 : vector<8x1xf32> to vector<8x8xf32>
      %36 = arith.addf %35, %34 : vector<8x8xf32>
      %37 = arith.subf %8, %36 : vector<8x8xf32>
      %cst_16 = arith.constant dense<0xFF800000> : vector<8xf32>
      %38 = vector.multi_reduction <maximumf>, %37, %cst_16 [1] : vector<8x8xf32> to vector<8xf32>
      %39 = vector.shape_cast %38 : vector<8xf32> to vector<8x1xf32>
      %40 = vector.broadcast %39 : vector<8x1xf32> to vector<8x8xf32>
      %41 = arith.subf %37, %40 : vector<8x8xf32>
      %42 = math.exp %41 : vector<8x8xf32>
      %cst_17 = arith.constant dense<0.000000e+00> : vector<8x16xf32>
      %43 = tpu.matmul %42, %5, %cst_17 {dimension_numbers = #tpu.dot_dimension_numbers<[1], [0], [0], [1], [0, 0, 1, 1], [], []>} : vector<8x8xf32>, vector<8x16xf32>, vector<8x16xf32> -> vector<8x16xf32>
      %44 = math.log %43 : vector<8x16xf32>
      %45 = vector.broadcast %39 : vector<8x1xf32> to vector<8x16xf32>
      %46 = arith.addf %45, %44 : vector<8x16xf32>
      %47 = arith.subf %11, %46 : vector<8x16xf32>
      %48 = arith.subf %37, %arg6 : vector<8x8xf32>
      %49 = math.absf %48 : vector<8x8xf32>
      %50 = vector.shape_cast %49 : vector<8x8xf32> to vector<1x8x8xf32>
      %cst_18 = arith.constant dense<0.000000e+00> : vector<1xf32>
      %51 = vector.multi_reduction <add>, %50, %cst_18 [1, 2] : vector<1x8x8xf32> to vector<1xf32>
      %52 = vector.shape_cast %51 : vector<1xf32> to vector<1x1x1xf32>
      %53 = vector.extract %52[0, 0, 0] : f32 from vector<1x1x1xf32>
      %cst_19 = arith.constant 1.250000e-03 : f32
      %54 = arith.mulf %cst_19, %53 : f32
      %c1_i32 = arith.constant 1 : i32
      %55 = arith.addi %arg5, %c1_i32 : i32
      scf.yield %55, %37, %47, %54 : i32, vector<8x8xf32>, vector<8x16xf32>, f32
    }
    %cst_10 = arith.constant dense<0xFF800000> : vector<8xf32>
    %15 = vector.multi_reduction <maximumf>, %14#1, %cst_10 [1] : vector<8x8xf32> to vector<8xf32>
    %16 = vector.shape_cast %15 : vector<8xf32> to vector<8x1xf32>
    %17 = vector.broadcast %16 : vector<8x1xf32> to vector<8x8xf32>
    %18 = arith.subf %14#1, %17 : vector<8x8xf32>
    %19 = math.exp %18 : vector<8x8xf32>
    %20 = arith.mulf %0, %19 : vector<8x8xf32>
    %cst_11 = arith.constant dense<0.000000e+00> : vector<8x16xf32>
    %21 = tpu.matmul %20, %5, %cst_11 {dimension_numbers = #tpu.dot_dimension_numbers<[1], [0], [0], [1], [0, 0, 1, 1], [], []>} : vector<8x8xf32>, vector<8x16xf32>, vector<8x16xf32> -> vector<8x16xf32>
    %22 = math.log %21 : vector<8x16xf32>
    %23 = arith.addf %22, %14#2 : vector<8x16xf32>
    %24 = vector.broadcast %16 : vector<8x1xf32> to vector<8x16xf32>
    %25 = arith.addf %23, %24 : vector<8x16xf32>
    %26 = math.exp %25 : vector<8x16xf32>
    %c0_12 = arith.constant 0 : index
    %c0_13 = arith.constant 0 : index
    %27 = vector.load %arg4[%c0_12, %c0_13] : memref<8x16xf32, #tpu.memory_space<vmem>>, vector<8x16xf32>
    tpu.vector_store %arg4[%c0_12, %c0_13], %26 {strides = array<i32>} : memref<8x16xf32, #tpu.memory_space<vmem>>, vector<8x16xf32>,
    return
  }
  func.func @transform_0(%arg0: i32) -> (i32, i32) {
    %c0_i32 = arith.constant 0 : i32
    %c0_i32_0 = arith.constant 0 : i32
    %c0_i32_1 = arith.constant 0 : i32
    return %c0_i32, %c0_i32_0 : i32, i32
  }
  func.func @transform_1(%arg0: i32) -> (i32, i32) {
    %c0_i32 = arith.constant 0 : i32
    %c0_i32_0 = arith.constant 0 : i32
    %c0_i32_1 = arith.constant 0 : i32
    return %c0_i32, %c0_i32_0 : i32, i32
  }
  func.func @transform_2(%arg0: i32) -> (i32, i32) {
    %c0_i32 = arith.constant 0 : i32
    %c0_i32_0 = arith.constant 0 : i32
    %c0_i32_1 = arith.constant 0 : i32
    return %c0_i32, %c0_i32_0 : i32, i32
  }
  func.func @transform_3(%arg0: i32) -> (i32, i32) {
    %c0_i32 = arith.constant 0 : i32
    %c0_i32_0 = arith.constant 0 : i32
    %c0_i32_1 = arith.constant 0 : i32
    return %c0_i32, %c0_i32_0 : i32, i32
  }
}

</mosaic_0001>

<bundles_post_ra>
// kernel: tpu_custom_call.1
= control target key start
LH: loop header
LB: loop body
LE: loop exit
PB: predicated region body
PF: predicated region fallthrough
CT: control target
= control target key end

     0   :  { %8 = vsyncpa [#allocation3], 0  ;;  %s691_s0 = inlined_call_operand.hbm [shape: f32[8,8], index: 0, kind: input, shape index: {}]   ;;  %s692_s1 = inlined_call_operand.hbm [shape: f32[8,16], index: 1, kind: input, shape index: {}]   ;;  %s693_s2 = inlined_call_operand.hbm [shape: f32[8,16], index: 2, kind: input, shape index: {}]   ;;  %s694_s3 = inlined_call_operand.hbm [shape: f32[8,16], index: 3, kind: output, shape index: {}]  }
   0x1   :  { %9 = vsyncpa [#allocation6], 0 }
   0x2   :  { %10 = vsyncpa [#allocation4], 0  ;;  %s574_s12 = smov [#allocation5]   ;;  %s575_s14 = smov [#allocation2]  }
   0x3   :  { %s27_s13 = sshll.u32 %s574_s12, 4  ;;  %s17_s15 = sshll.u32 %s575_s14, 4  ;;  %s28_s13 = int_to_ptr.vmem [resolvable:$true] %s27_s13  ;;  %s18_s15 = int_to_ptr.vmem [resolvable:$true] %s17_s15 }
   0x4   :  { %s456_s18 = scalar_lea.hbm %s692_s1, 128 }
   0x5   :  { %p457_p0 = scmp.ne.s32.totalorder %s692_s1, %s456_s18  ;;  %p460_p1 = scmp.lt.u32.totalorder %s456_s18, %s692_s1 }
   0x7   :  { %p462_p2 = pnand %p460_p1, %p457_p0 }
   0x9   :  { %465 = shalt.err (!%p462_p2)
}
   0xa   :  { %s466_s23 = scalar_lea.vmem %s28_s13, 128  ;;  %p471_p4 = scmp.lt.s32.totalorder %s28_s13, %s28_s13 }
   0xb   :  { %p467_p3 = scmp.ne.s32.totalorder %s28_s13, %s466_s23  ;;  %p472_p5 = scmp.lt.s32.totalorder %s466_s23, %s466_s23 }
   0xd   :  { %p473_p6 = por %p472_p5, %p471_p4 }
   0xf   :  { %p474_p7 = pnand %p473_p6, %p467_p3 }
  0x11   :  { %477 = shalt.err (!%p474_p7)
}
  0x12   :  { %30 = dma.hbm_to_vmem [thread:$0]  %s692_s1, 128, %s28_s13, [#allocation6]  }
  0x13   :  { %s478_s28 = scalar_lea.hbm %s691_s0, 128 }
  0x14   :  { %p479_p8 = scmp.ne.s32.totalorder %s691_s0, %s478_s28  ;;  %p482_p9 = scmp.lt.u32.totalorder %s478_s28, %s691_s0 }
  0x16   :  { %p484_p10 = pnand %p482_p9, %p479_p8 }
  0x18   :  { %487 = shalt.err (!%p484_p10)
}
  0x19   :  { %s488_s6 = scalar_lea.vmem %s18_s15, 128  ;;  %p493_p12 = scmp.lt.s32.totalorder %s18_s15, %s18_s15 }
  0x1a   :  { %p489_p11 = scmp.ne.s32.totalorder %s18_s15, %s488_s6  ;;  %p494_p13 = scmp.lt.s32.totalorder %s488_s6, %s488_s6 }
  0x1c   :  { %p495_p0 = por %p494_p13, %p493_p12 }
  0x1e   :  { %p496_p1 = pnand %p495_p0, %p489_p11 }
  0x20   :  { %499 = shalt.err (!%p496_p1)
}
  0x21   :  { %20 = dma.hbm_to_vmem [thread:$0]  %s691_s0, 128, %s18_s15, [#allocation3]  }
  0x22   :  { %s576_s8 = smov [#allocation7]   ;;  %s500_s12 = scalar_lea.hbm %s693_s2, 128 }
  0x23   :  { %s37_s9 = sshll.u32 %s576_s8, 4  ;;  %p501_p2 = scmp.ne.s32.totalorder %s693_s2, %s500_s12  ;;  %s38_s9 = int_to_ptr.vmem [resolvable:$true] %s37_s9 }
  0x24   :  { %p504_p3 = scmp.lt.u32.totalorder %s500_s12, %s693_s2 }
  0x26   :  { %p506_p4 = pnand %p504_p3, %p501_p2 }
  0x28   :  { %509 = shalt.err (!%p506_p4)
}
  0x29   :  { %s510_s18 = scalar_lea.vmem %s38_s9, 128  ;;  %p515_p6 = scmp.lt.s32.totalorder %s38_s9, %s38_s9 }
  0x2a   :  { %p511_p5 = scmp.ne.s32.totalorder %s38_s9, %s510_s18  ;;  %p516_p7 = scmp.lt.s32.totalorder %s510_s18, %s510_s18 }
  0x2c   :  { %p517_p8 = por %p516_p7, %p515_p6 }
  0x2e   :  { %p518_p9 = pnand %p517_p8, %p511_p5 }
  0x30   :  { %521 = shalt.err (!%p518_p9)
}
  0x31   :  { %40 = dma.hbm_to_vmem [thread:$0]  %s693_s2, 128, %s38_s9, [#allocation6]  }
  0x32   :  { %556 = dma.done.wait [#allocation3], 128  }
  0x33   :  { %557 = vsyncadd [#allocation3], 4294967168 }
  0x34   :  { %558 = dma.done.wait [#allocation6], 256  }
  0x35   :  { %559 = vsyncadd [#allocation6], 4294967040  ;;  %v638_v0 = vld [vmem:[#allocation2] sm:$0xff]  ;;  %v51_v1 = vld [vmem:[#allocation5] sm:$0xff]  ;;  %v647_v12 = vmov 0.0   ;;  %v649_v13 = vmov 0.0  }
  0x36   :  { %v52_v2 = vld [vmem:[#allocation7] sm:$0xff]  ;;  %v56_v4 = vadd.f32 1e-08, %v638_v0  ;;  %v59_v5 = vadd.f32 1e-08, %v51_v1  ;;  %s651_s2 = smov 0  }
  0x37   :  { %v53_v3 = vmul.f32 -100.0, %v52_v2 }
  0x38   :  { %436 = vlog2.f32 %v56_v4 }
  0x39   :  { %v54_v6 = vmul.f32 1.442695, %v53_v3  ;;  %438 = vlog2.f32 %v59_v5 }
  0x3b   :  { %440 = vpow2.f32 %v54_v6 }
  0x42   :  { %v437_v7 = vpop.eup %436 }
  0x43   :  { %v439_v8 = vpop.eup %438  ;;  %v641_v9 = vmul.f32 0.6931472, %v437_v7 }
  0x44   :  { %v645_v11 = vmul.f32 0.6931472, %v439_v8 }
  0x45   :  { %v643_v10 = vpop.eup %440 }
  0x46 LB: > { %vm73_vm0 = vcmask 130048   ;;  %v577_v15 = vmov 0.0   ;;  %vm578_vm1 = vmmov 0   ;;  %vm160_vm2 = vcmask 64512   ;;  %s257_s2 = sadd.s32 1, %s572_s2   ;;  %s572_s2 = sphi %s651_s2, %s257_s2   ;;  %v568_v13 = vphi %v649_v13, %v696_v13   ;;  %v564_v12 = vphi %v647_v12, %v695_v12  }
  0x47   : > { %v74_v14 = vsel %vm73_vm0, %v564_v12, -inf  ;;  %387 = vmatprep.subr.mxu0 %v577_v15  ;;  %389 = vmatprep.mubr.msk.f32.mxu0 %vm578_vm1, %v577_v15  ;;  %p67_p10 = scmp.lt.s32.totalorder %s257_s2, 200 }
  0x48   : > { %75 = vmax.xlane.f32.xlu0 %v74_v14  ;;  %388 = vmatpush3.xpose.msk.msra.mxu0 %vm73_vm0, %v643_v10 }
  0x49   : > { %392 = vmatprep.subr.mxu1 %v577_v15  ;;  %394 = vmatprep.mubr.msk.f32.mxu1 %vm578_vm1, %v577_v15 }
  0x4a   : > { %393 = vmatpush3.msra.mxu1 %v643_v10 }
  0xd5   : > { %v76_v16 = vpop.xlane.xlu0 %75 }
  0xd6   : > { %v77_v17 = vsub.f32 %v564_v12, %v76_v16 }
  0xd8   : > { %v78_v18 = vmul.f32 1.442695, %v77_v17 }
  0xda   : > { %442 = vpow2.f32 %v78_v18 }
  0xe4   : > { %v443_v19 = vpop.eup %442 }
  0xe5   : > { %390 = vmatmul.mubr.msk.f32.vlgmr.msra.gmra.mrb[0].mxu0 %vm73_vm0, %v443_v19 }
 0x1b8   : > { %v152_v20 = vpop.f32.mrb[0].mxu0 }
 0x1b9   : > { %444 = vlog2.f32 %v152_v20  ;;  %v391_v21 = vpop.f32.mrb[1].mxu0 }
 0x1c3   : > { %v445_v22 = vpop.eup %444 }
 0x1c4   : > { %v157_v23 = vmul.f32 0.6931472, %v445_v22 }
 0x1c6   : > { %v158_v24 = vadd.f32 %v157_v23, %v76_v16 }
 0x1c8   : > { %v159_v25 = vsub.f32 %v641_v9, %v158_v24  }
 0x1ca   : > { %v161_v26 = vsel %vm160_vm2, %v159_v25, -inf  ;;  %v244_v27 = vsub.f32 %v159_v25, %v568_v13  ;;  %v696_v13 = vmov %v159_v25 }
 0x1cb   : > { %162 = vmax.xlane.f32.xlu0 %v161_v26 }
 0x1cc   : > { %v245_v28 = vand.u32 2147483647, %v244_v27 }
 0x1ce   : > { %v246_v29 = vsel %vm160_vm2, %v245_v28, 0.0 }
 0x1cf   : > { %247 = vadd.xlane.f32.xlu1 %v246_v29 }
 0x258   : > { %v163_v30 = vpop.xlane.xlu0 %162 }
 0x259   : > { %v164_v31 = vsub.f32 %v159_v25, %v163_v30 }
 0x25b   : > { %v165_v32 = vmul.f32 1.442695, %v164_v31 }
 0x25c   : > { %v248_v33 = vpop.xlane.xlu1 %247 }
 0x25d   : > { %446 = vpow2.f32 %v165_v32  ;;  %v249_v34 = vrot.slane %v248_v33, 4 }
 0x25f   : > { %v250_v35 = vadd.f32 %v249_v34, %v248_v33 }
 0x261   : > { %v251_v36 = vrot.slane %v250_v35, 2 }
 0x263   : > { %v252_v37 = vadd.f32 %v251_v36, %v250_v35 }
 0x265   : > { %v253_v38 = vrot.slane %v252_v37, 1 }
 0x267   : > { %v447_v39 = vpop.eup %446  ;;  %v254_v40 = vadd.f32 %v253_v38, %v252_v37 }
 0x268   : > { %395 = vmatmul.mubr.msk.f32.vlgmr.msra.gmra.mrb[0].mxu1 %vm160_vm2, %v447_v39 }
 0x269   : > { %402 = vpush %v254_v40 }
 0x29a   : > { %s403_s19 = spop %402 }
 0x29b   : > { %s256_s20 = smul.f32 0.00125, %s403_s19 }
 0x29d   : > { %p68_p11 = scmp.ge.f32.partialorder %s256_s20, 0.1 }
 0x29f   : > { %p69_p12 = pnand %p68_p11, %p67_p10 }
 0x2a0   :  { %260 = vmax.xlane.f32.xlu0 (%p69_p12), %v161_v26  ;;  %v579_v47 = vmov (%p69_p12), 0.0   ;;  %vm580_vm3 = vmmov (%p69_p12), 0   ;;  %s581_s21 = smov (%p69_p12), [#allocation8]  }
 0x2a1   :  { %397 = vmatprep.subr.mxu0 (%p69_p12), %v579_v47  ;;  %399 = vmatprep.mubr.msk.f32.mxu0 (%p69_p12), %vm580_vm3, %v579_v47  ;;  %s353_s22 = sshll.u32 (%p69_p12), %s581_s21, 4  ;;  %s354_s22 = int_to_ptr.vmem [resolvable:$true] %s353_s22 }
 0x2a2   :  { %398 = vmatpush3.msra.mxu0 (%p69_p12), %v643_v10  ;;  %s522_s23 = scalar_lea.vmem (%p69_p12), %s354_s22, 128  ;;  %p527_p0 = scmp.lt.s32.totalorder (%p69_p12), %s354_s22, %s354_s22 }
 0x2a3   :  { %p523_p13 = scmp.ne.s32.totalorder (%p69_p12), %s354_s22, %s522_s23  ;;  %p528_p1 = scmp.lt.s32.totalorder (%p69_p12), %s522_s23, %s522_s23 }
 0x2a5   :  { %p529_p2 = por (%p69_p12), %p528_p1, %p527_p0 }
 0x2a7   :  { %p530_p3 = pnand (%p69_p12), %p529_p2, %p523_p13 }
 0x32d   :  { %v261_v48 = vpop.xlane.xlu0 (%p69_p12), %260 }
 0x32e   :  { %v262_v49 = vsub.f32 (%p69_p12), %v159_v25, %v261_v48 }
 0x330   :  { %v263_v50 = vmul.f32 (%p69_p12), 1.442695, %v262_v49 }
 0x33b   : > { %v236_v41 = vpop.f32.mrb[0].mxu1 }
 0x33c   : > { %448 = vlog2.f32 %v236_v41  ;;  %v396_v42 = vpop.f32.mrb[1].mxu1 }
 0x33d   :  { %450 = vpow2.f32 (%p69_p12), %v263_v50 }
 0x346   : > { %v449_v43 = vpop.eup %448 }
 0x347   : > { %v241_v44 = vmul.f32 0.6931472, %v449_v43  ;;  %72 = sbr.rel (!%p69_p12) target bundleno = 70 (0x46), region = 51  ;;  %v451_v51 = vpop.eup (%p69_p12), %450 }
 0x348   :  { %v265_v52 = vmul.f32 (%p69_p12), %v451_v51, %v638_v0 }
 0x349   : > { %v242_v45 = vadd.f32 %v241_v44, %v163_v30 }
 0x34a   :  { %400 = vmatmul.mubr.msk.f32.vlgmr.msra.gmra.mrb[0].mxu0 (%p69_p12), %vm160_vm2, %v265_v52 }
 0x34b   : > { %v243_v46 = vsub.f32 %v645_v11, %v242_v45  }
 0x34d   : > { %v695_v12 = vmov %v243_v46 }
 0x41d   :  { %v335_v53 = vpop.f32.mrb[0].mxu0 }
 0x41e   :  { %452 = vlog2.f32 %v335_v53  ;;  %v401_v54 = vpop.f32.mrb[1].mxu0 }
 0x428   :  { %v453_v55 = vpop.eup %452 }
 0x429   :  { %v340_v56 = vmul.f32 0.6931472, %v453_v55 }
 0x42b   :  { %v341_v57 = vadd.f32 %v340_v56, %v243_v46 }
 0x42d   :  { %v342_v58 = vadd.f32 %v341_v57, %v261_v48 }
 0x42f   :  { %v343_v59 = vmul.f32 1.442695, %v342_v58 }
 0x431   :  { %454 = vpow2.f32 %v343_v59 }
 0x43b   :  { %v455_v60 = vpop.eup %454 }
 0x43c   :  { %346 = vst.msk [vmem:[#allocation8] sm:$0xff] %vm73_vm0, %v455_v60 }
 0x43d   :  { %533 = shalt.err (!%p530_p3)
}
 0x43e   :  { %s534_s26 = scalar_lea.hbm %s694_s3, 128 }
 0x43f   :  { %p535_p4 = scmp.ne.s32.totalorder %s694_s3, %s534_s26  ;;  %p538_p5 = scmp.lt.u32.totalorder %s534_s26, %s694_s3 }
 0x441   :  { %p540_p6 = pnand %p538_p5, %p535_p4 }
 0x443   :  { %543 = shalt.err (!%p540_p6)
}
 0x444   :  { %356 = dma.vmem_to_hbm [thread:$0]  %s354_s22, 128, %s694_s3, [#allocation4]  }
 0x445   :  { %560 = dma.done.wait [#allocation4], 128  }
 0x446   :  { %561 = vsyncadd [#allocation4], 4294967168 }
 0x447   :  { %360 = vsyncpa [#allocation3], 1 }
 0x448   :  { %361 = vsyncpa [#allocation6], 1 }
 0x449   :  { %362 = vsyncpa [#allocation4], 1 }

</bundles_post_ra>
